<compile_context>
chip_gen: v7x
topology: tpu7x:2x2x1
jax: 0.10.0
libtpu: 0.0.40
codegen_flags: <defaults>
</compile_context>

<pallas_src>
import jax
import jax.numpy as jnp
from jax.experimental import pallas as pl
from jax.experimental.pallas import tpu as pltpu

_LANES = 128
_SUBLANES = 8


def _round_up(v, m):
    return ((v + m - 1) // m) * m


def _default_tile_c():
    """256-wide Cout tiles on 256-wide-MXU chips (v6e / v7x), else 128."""
    try:
        kind = jax.devices()[0].device_kind.lower()
        if ("v6" in kind) or ("v7" in kind) or ("7x" in kind):
            return 256
    except Exception:
        pass
    return _LANES


def _conv_bn_kernel(p_ref, w_ref, s_ref, b_ref, o_ref):
    """One output tile: (TC, TM) = (TC, K) @ (K, TM), then the BN epilogue.

    p_ref: (1, K_p, TM)  im2col patches (spatial on the lane axis)
    w_ref: (TC, K_p)     unscaled conv weights for this Cout tile
    s_ref: (TC, 1)       BN scale  = gamma / sqrt(var + eps)   (f32)
    b_ref: (TC, 1)       BN bias   = beta - mean * scale       (f32)
    o_ref: (1, TC, TM)   output tile (Cout on sublanes, spatial on lanes)
    """
    acc = jnp.dot(w_ref[...], p_ref[0, :, :], preferred_element_type=jnp.float32)
    o_ref[0, :, :] = (acc * s_ref[...] + b_ref[...]).astype(o_ref.dtype)


def conv_bn(x_nchw, weight_oihw, gamma, beta, running_mean, running_var, *,
            stride=1, pad=1, eps=1e-5, compute_dtype=jnp.bfloat16,
            tile_c=None, tile_m=None):
    """Forward pass matching torch: bn(conv(x)), BatchNorm in eval mode."""
    N, Cin, H, W = x_nchw.shape
    Cout, Cin_w, KH, KW = weight_oihw.shape
    assert Cin_w == Cin
    H_out = (H + 2 * pad - KH) // stride + 1
    W_out = (W + 2 * pad - KW) // stride + 1
    assert H_out > 0 and W_out > 0
    out_dtype = x_nchw.dtype

    # Eval-mode BatchNorm, applied as an f32 epilogue inside the kernel.
    # TODO(synk): training-mode BatchNorm (batch statistics + running-stat
    # updates) is not implemented; eval-mode only.
    scale = (gamma.astype(jnp.float32) /
             jnp.sqrt(running_var.astype(jnp.float32) + eps))          # (Cout,)
    bias = beta.astype(jnp.float32) - running_mean.astype(jnp.float32) * scale

    K = Cin * KH * KW
    M = H_out * W_out

    if tile_c is None:
        tile_c = _default_tile_c()
    TC = max(_LANES, _round_up(tile_c, _LANES))
    if tile_m is None:
        # Keep the f32 result tile at <= 32 vregs (128 KiB).
        tile_m = 256 if TC == _LANES else 128
    TM = min(max(_LANES, _round_up(tile_m, _LANES)), _round_up(M, _LANES))

    Cout_p = _round_up(Cout, TC)
    K_p = _round_up(K, _SUBLANES)
    Mp = _round_up(M, TM)

    # im2col patches: (N, K, M) with K ordered (ci, kh, kw) to match
    # weight_oihw.reshape(Cout, K).  Pure data movement (layout plumbing);
    # every FLOP of the conv + BN happens inside the Pallas kernel.
    # TODO(synk): for large-Cin layers a direct (halo-DMA) conv kernel avoids
    # the KH*KW x activation duplication in HBM; this path targets the
    # small-Cin / MXU-K-underfill case flagged in review.
    # TODO(synk): for tiny feature maps (H*W < 128), fold batch into the
    # spatial M dim to keep MXU row fill.
    xp = jnp.pad(x_nchw, ((0, 0), (0, 0), (pad, pad), (pad, pad)))
    taps = [
        xp[:, :,
           kh:kh + stride * (H_out - 1) + 1:stride,
           kw:kw + stride * (W_out - 1) + 1:stride]
        for kh in range(KH) for kw in range(KW)
    ]
    patches = jnp.stack(taps, axis=2).reshape(N, K, M)
    patches = jnp.pad(patches, ((0, 0), (0, K_p - K), (0, Mp - M)))
    patches = patches.astype(compute_dtype)

    w2 = weight_oihw.reshape(Cout, K)
    w2 = jnp.pad(w2, ((0, Cout_p - Cout), (0, K_p - K))).astype(compute_dtype)
    scale_p = jnp.pad(scale, (0, Cout_p - Cout)).reshape(Cout_p, 1)
    bias_p = jnp.pad(bias, (0, Cout_p - Cout)).reshape(Cout_p, 1)

    # Spatial tiles innermost -> weight/scale/bias blocks (index depends only
    # on c) are fetched once per (n, c) and stay resident across all m steps.
    grid = (N, Cout_p // TC, Mp // TM)

    out = pl.pallas_call(
        _conv_bn_kernel,
        out_shape=jax.ShapeDtypeStruct((N, Cout_p, Mp), out_dtype),
        grid=grid,
        in_specs=[
            pl.BlockSpec((1, K_p, TM), lambda n, c, m: (n, 0, m)),
            pl.BlockSpec((TC, K_p), lambda n, c, m: (c, 0)),
            pl.BlockSpec((TC, 1), lambda n, c, m: (c, 0)),
            pl.BlockSpec((TC, 1), lambda n, c, m: (c, 0)),
        ],
        out_specs=pl.BlockSpec((1, TC, TM), lambda n, c, m: (n, c, m)),
        compiler_params=pltpu.CompilerParams(
            dimension_semantics=("parallel", "parallel", "parallel"),
            vmem_limit_bytes=32 * 1024 * 1024,
        ),
    )(patches, w2, scale_p, bias_p)

    # Drop padding; (N, Cout, H*W) is already NCHW-flat -> reshape only.
    return out[:, :Cout, :M].reshape(N, Cout, H_out, W_out)


def _reference(x_nchw, weight_oihw, gamma, beta, running_mean, running_var,
               *, stride=1, pad=1, eps=1e-5):
    y = jax.lax.conv_general_dilated(
        x_nchw, weight_oihw, window_strides=(stride, stride),
        padding=[(pad, pad), (pad, pad)],
        dimension_numbers=("NCHW", "OIHW", "NCHW"),
        precision=jax.lax.Precision.HIGHEST)
    scale = gamma / jnp.sqrt(running_var + eps)
    bias = beta - running_mean * scale
    return y * scale[None, :, None, None] + bias[None, :, None, None]


if __name__ == "__main__":
    key = jax.random.PRNGKey(0)
    k_x, k_w, k_g, k_b, k_m, k_v = jax.random.split(key, 6)

    N, Cin, Cout, H, W = 2, 4, 8, 16, 16
    KH = KW = 3

    x = jax.random.normal(k_x, (N, Cin, H, W), dtype=jnp.float32)
    weight = jax.random.normal(k_w, (Cout, Cin, KH, KW), dtype=jnp.float32) * 0.1
    gamma = 1.0 + 0.1 * jax.random.normal(k_g, (Cout,), dtype=jnp.float32)
    beta = 0.1 * jax.random.normal(k_b, (Cout,), dtype=jnp.float32)
    running_mean = 0.1 * jax.random.normal(k_m, (Cout,), dtype=jnp.float32)
    running_var = jnp.abs(1.0 + 0.1 * jax.random.normal(k_v, (Cout,), dtype=jnp.float32))

    ref = _reference(x, weight, gamma, beta, running_mean, running_var)

    # Exact f32 MXU path: tight tolerance.
    out_f32 = jax.block_until_ready(
        conv_bn(x, weight, gamma, beta, running_mean, running_var,
                compute_dtype=jnp.float32))
    assert out_f32.shape == (N, Cout, H, W)
    assert jnp.allclose(out_f32, ref, atol=5e-4, rtol=5e-4)

    # Default bf16 MXU path (f32 accumulate): looser tolerance for input rounding.
    out_bf16 = jax.block_until_ready(
        conv_bn(x, weight, gamma, beta, running_mean, running_var))
    assert out_bf16.shape == (N, Cout, H, W)
    assert jnp.allclose(out_bf16, ref, atol=5e-2, rtol=5e-2)

    # Wide-Cout-tile path (v6e/v7x default tiling; also valid on v5e).
    out_wide = jax.block_until_ready(
        conv_bn(x, weight, gamma, beta, running_mean, running_var,
                tile_c=256, tile_m=128))
    assert out_wide.shape == (N, Cout, H, W)
    assert jnp.allclose(out_wide, ref, atol=5e-2, rtol=5e-2)

    print("KERNEL_OK")
</pallas_src>

<mosaic_0001>
module attributes {stable_mosaic.version = 11 : i64} {
  func.func @_conv_bn_kernel(%arg0: i32, %arg1: i32, %arg2: i32, %arg3: memref<1x40x256xf32, #tpu.memory_space<vmem>>, %arg4: memref<128x40xf32, #tpu.memory_space<vmem>>, %arg5: memref<128x1xf32, #tpu.memory_space<vmem>>, %arg6: memref<128x1xf32, #tpu.memory_space<vmem>>, %arg7: memref<1x128x256xf32, #tpu.memory_space<vmem>>) attributes {dimension_semantics = [#tpu.dimension_semantics<parallel>, #tpu.dimension_semantics<parallel>, #tpu.dimension_semantics<parallel>], iteration_bounds = array<i64: 2, 1, 1>, scalar_prefetch = 0 : i64, scratch_operands = 0 : i64, tpu.core_type = #tpu.core_type<tc>, window_params = [{transform_indices = @transform_0, window_bounds = array<i64: 1, 40, 256>}, {transform_indices = @transform_1, window_bounds = array<i64: 128, 40>}, {transform_indices = @transform_2, window_bounds = array<i64: 128, 1>}, {transform_indices = @transform_3, window_bounds = array<i64: 128, 1>}, {transform_indices = @transform_4, window_bounds = array<i64: 1, 128, 256>}]} {
    %c0 = arith.constant 0 : index
    %c0_0 = arith.constant 0 : index
    %0 = vector.load %arg4[%c0, %c0_0] : memref<128x40xf32, #tpu.memory_space<vmem>>, vector<128x40xf32>
    %c0_1 = arith.constant 0 : index
    %c0_2 = arith.constant 0 : index
    %c0_3 = arith.constant 0 : index
    %1 = vector.load %arg3[%c0_1, %c0_2, %c0_3] : memref<1x40x256xf32, #tpu.memory_space<vmem>>, vector<1x40x256xf32>
    %2 = vector.shape_cast %1 : vector<1x40x256xf32> to vector<40x256xf32>
    %cst = arith.constant dense<0.000000e+00> : vector<128x256xf32>
    %3 = tpu.matmul %0, %2, %cst {dimension_numbers = #tpu.dot_dimension_numbers<[1], [0], [0], [1], [0, 0, 1, 1], [], []>} : vector<128x40xf32>, vector<40x256xf32>, vector<128x256xf32> -> vector<128x256xf32>
    %c0_4 = arith.constant 0 : index
    %c0_5 = arith.constant 0 : index
    %4 = vector.load %arg5[%c0_4, %c0_5] : memref<128x1xf32, #tpu.memory_space<vmem>>, vector<128x1xf32>
    %5 = vector.broadcast %4 : vector<128x1xf32> to vector<128x256xf32>
    %6 = arith.mulf %3, %5 : vector<128x256xf32>
    %c0_6 = arith.constant 0 : index
    %c0_7 = arith.constant 0 : index
    %7 = vector.load %arg6[%c0_6, %c0_7] : memref<128x1xf32, #tpu.memory_space<vmem>>, vector<128x1xf32>
    %8 = vector.broadcast %7 : vector<128x1xf32> to vector<128x256xf32>
    %9 = arith.addf %6, %8 : vector<128x256xf32>
    %c0_8 = arith.constant 0 : index
    %c0_9 = arith.constant 0 : index
    %c0_10 = arith.constant 0 : index
    %10 = vector.load %arg7[%c0_8, %c0_9, %c0_10] : memref<1x128x256xf32, #tpu.memory_space<vmem>>, vector<1x128x256xf32>
    %11 = vector.shape_cast %10 : vector<1x128x256xf32> to vector<128x256xf32>
    %12 = vector.shape_cast %9 : vector<128x256xf32> to vector<1x128x256xf32>
    tpu.vector_store %arg7[%c0_8, %c0_9, %c0_10], %12 {strides = array<i32>} : memref<1x128x256xf32, #tpu.memory_space<vmem>>, vector<1x128x256xf32>,
    return
  }
  func.func @transform_0(%arg0: i32, %arg1: i32, %arg2: i32) -> (i32, i32, i32) {
    %c0_i32 = arith.constant 0 : i32
    %c0_i32_0 = arith.constant 0 : i32
    return %arg0, %c0_i32, %arg2 : i32, i32, i32
  }
  func.func @transform_1(%arg0: i32, %arg1: i32, %arg2: i32) -> (i32, i32) {
    %c0_i32 = arith.constant 0 : i32
    %c0_i32_0 = arith.constant 0 : i32
    return %arg1, %c0_i32 : i32, i32
  }
  func.func @transform_2(%arg0: i32, %arg1: i32, %arg2: i32) -> (i32, i32) {
    %c0_i32 = arith.constant 0 : i32
    %c0_i32_0 = arith.constant 0 : i32
    return %arg1, %c0_i32 : i32, i32
  }
  func.func @transform_3(%arg0: i32, %arg1: i32, %arg2: i32) -> (i32, i32) {
    %c0_i32 = arith.constant 0 : i32
    %c0_i32_0 = arith.constant 0 : i32
    return %arg1, %c0_i32 : i32, i32
  }
  func.func @transform_4(%arg0: i32, %arg1: i32, %arg2: i32) -> (i32, i32, i32) {
    %c0_i32 = arith.constant 0 : i32
    return %arg0, %arg1, %arg2 : i32, i32, i32
  }
}

</mosaic_0001>

<bundles_post_ra>
// kernel: tpu_custom_call.1
= control target key start
LH: loop header
LB: loop body
LE: loop exit
PB: predicated region body
PF: predicated region fallthrough
CT: control target
= control target key end

     0   :  { %9 = vsyncpa [#allocation3], 0  ;;  %s1599_s0 = inlined_call_operand.vmem [shape: f32[2,40,256], index: 0, kind: input, shape index: {}]   ;;  %s1600_s1 = inlined_call_operand.vmem [shape: f32[128,40], index: 1, kind: input, shape index: {}]   ;;  %s1601_s2 = inlined_call_operand.vmem [shape: f32[128,1], index: 2, kind: input, shape index: {}]   ;;  %s1602_s3 = inlined_call_operand.vmem [shape: f32[128,1], index: 3, kind: input, shape index: {}]   ;;  %s1603_s4 = inlined_call_operand.hbm [shape: f32[2,128,256], index: 4, kind: output, shape index: {}]  }
   0x1   :  { %11 = vsyncpa [#allocation3 + $0x1], 0  ;;  %s1193_s15 = smov 0   ;;  %s1195_s16 = smov 0  }
   0x2   :  { %s1197_s17 = smov 0   ;;  %s1199_s18 = smov 0  }
   0x3   :  { %s1201_s19 = smov 0   ;;  %s1203_s20 = smov 0  }
   0x4 LB: > { %s975_s21 = sadd.s32 4294967295, %s1161_s20   ;;  %s976_s22 = sadd.s32 4294967294, %s1161_s20   ;;  %s1161_s20 = sphi %s1203_s20, %s17_s20   ;;  %s1157_s19 = sphi %s1201_s19, %s1610_s19   ;;  %s1153_s18 = sphi %s1199_s18, %s1609_s18   ;;  %s1149_s17 = sphi %s1197_s17, %s1608_s17   ;;  %s1145_s16 = sphi %s1195_s16, %s1607_s16   ;;  %s1141_s15 = sphi %s1193_s15, %s1606_s15  }
   0x5   : > { %s36_s23 = sadd.s32 1, %s1157_s19  ;;  %s153_s24 = sadd.s32 1, %s1149_s17 }
   0x6   : > { %p38_p0 = scmp.ge.s32.totalorder %s36_s23, 2  ;;  %p163_p1 = scmp.ne.s32.totalorder %s1149_s17, %s1145_s16 }
   0x7   : > { %p164_p2 = scmp.eq.s32.totalorder %s975_s21, 1  ;;  %p169_p3 = scmp.ne.s32.totalorder %s1145_s16, %s1141_s15 }
   0x8   : > { %s1612_s23 = smov (%p38_p0, %s36_s23), 0  ;;  %p170_p5 = scmp.eq.s32.totalorder %s976_s22, 1 }
   0x9   : > { %p1233_p4 = por %p164_p2, %p163_p1  ;;  %s146_s26 = ssub.s32 %s1157_s19, %s1612_s23 }
   0xa   : > { %p982_p6 = scmp.ge.s32.totalorder %s1161_s20, 1  ;;  %p151_p7 = scmp.eq.s32.totalorder %s146_s26, 0 }
   0xb   : > { %p1240_p8 = por %p170_p5, %p169_p3  ;;  %p228_p9 = scmp.lt.s32.totalorder %s1161_s20, 3 }
   0xc   : > { %s1246_s28 = scalar_select %p151_p7, %s1149_s17, %s153_s24  }
   0xd   : > { %p229_p10 = pnand %p982_p6, %p228_p9 }
   0xe   : > { %p274_p11 = scmp.lt.s32.totalorder (!%p229_p10), %s1153_s18, 1  ;;  %v541_v0 = vld [vmem:[%s1601_s2 + $0x10] sm:$0xff] (!%p229_p10)  ;;  %v539_v1 = vld [vmem:[%s1601_s2] sm:$0xff] (!%p229_p10)  ;;  %v1163_v2 = vmov (!%p229_p10), 0   ;;  %v542_v3 = vld [vmem:[%s1601_s2 + $0x18] sm:$0xff] (!%p229_p10)  ;;  %v1164_v5 = vmov (!%p229_p10), 0.0  }
   0xf   : > { %232 = sbr.rel (%p229_p10) target bundleno = 300 (0x12c), region = 36  ;;  %1082 = vset.pattern.permute.xlu1 (!%p229_p10), %v1163_v2  ;;  %1081 = vset.pattern.permute.xlu0 (!%p229_p10), %v1163_v2  ;;  %v540_v4 = vld [vmem:[%s1601_s2 + $0x8] sm:$0xff] (!%p229_p10)  ;;  %v543_v18 = vld [vmem:[%s1601_s2 + $0x20] sm:$0xff] (!%p229_p10)  ;;  %v546_v21 = vld [vmem:[%s1601_s2 + $0x38] sm:$0xff] (!%p229_p10)  ;;  %vm329_vm0 = vcmask (!%p229_p10), 326656   ;;  %s270_s8 = sand.u32 (!%p229_p10), 1, %s1145_s16  }
  0x10   : > { %567 = vperm.xlu1 (!%p229_p10), %1082, %v541_v0   ;;  %557 = vperm.xlu0 (!%p229_p10), %1081, %v539_v1   ;;  %v544_v17 = vld [vmem:[%s1601_s2 + $0x28] sm:$0xff] (!%p229_p10)  ;;  %v545_v22 = vld [vmem:[%s1601_s2 + $0x30] sm:$0xff] (!%p229_p10)  ;;  %v303_v24 = vld [vmem:[%s1600_s1] sm:$0xff] (!%p229_p10)  ;;  %s983_s9 = sshll.u32 (!%p229_p10), %s270_s8, 8  ;;  %s1006_s11 = sshll.u32 (!%p229_p10), %s1153_s18, 12 }
  0x11   : > { %442 = vmatprep.mubr.f32.mxu0 (!%p229_p10), %v1164_v5  ;;  %490 = vmatprep.mubr.f32.mxu1 (!%p229_p10), %v1164_v5  ;;  %v311_v25 = vld [vmem:[%s1600_s1 + $0x40] sm:$0xff] (!%p229_p10)  ;;  %v548_v26 = vld [vmem:[%s1601_s2 + $0x48] sm:$0xff] (!%p229_p10)  ;;  %v550_v30 = vld [vmem:[%s1601_s2 + $0x58] sm:$0xff] (!%p229_p10)  ;;  %s1476_s10 = scalar_lea.vmem (!%p229_p10), [#allocation2], %s983_s9  ;;  %s1542_s14 = scalar_lea.hbm (!%p229_p10), %s1603_s4, %s1006_s11 }
  0x12   : > { %v547_v27 = vld [vmem:[%s1601_s2 + $0x40] sm:$0xff] (!%p229_p10)  ;;  %v304_v28 = vld [vmem:[%s1600_s1 + $0x8] sm:$0xff] (!%p229_p10)  ;;  %v549_v31 = vld [vmem:[%s1601_s2 + $0x50] sm:$0xff] (!%p229_p10)  ;;  %s1553_s22 = scalar_lea.sflag (!%p229_p10), [#allocation3], %s270_s8  ;;  %s1165_s24 = smov (!%p229_p10), [#allocation2]  }
  0x13   : > { %v312_v29 = vld [vmem:[%s1600_s1 + $0x48] sm:$0xff] (!%p229_p10)  ;;  %v305_v32 = vld [vmem:[%s1600_s1 + $0x10] sm:$0xff] (!%p229_p10)  ;;  %v551_v35 = vld [vmem:[%s1601_s2 + $0x60] sm:$0xff] (!%p229_p10)  ;;  %s1087_s26 = sshll.u32 (!%p229_p10), %s1165_s24, 4  ;;  %s1088_s26 = int_to_ptr.vmem [resolvable:$false] %s1087_s26 }
  0x14   : > { %572 = vperm.xlu1 (!%p229_p10), %1082, %v542_v3   ;;  %562 = vperm.xlu0 (!%p229_p10), %1081, %v540_v4   ;;  %v313_v33 = vld [vmem:[%s1600_s1 + $0x50] sm:$0xff] (!%p229_p10)  ;;  %v552_v34 = vld [vmem:[%s1601_s2 + $0x68] sm:$0xff] (!%p229_p10)  ;;  %v306_v36 = vld [vmem:[%s1600_s1 + $0x18] sm:$0xff] (!%p229_p10)  ;;  %s1089_s29 = scalar_lea.vmem (!%p229_p10), %s1088_s26, 8192 }
  0x15   : > { %v314_v37 = vld [vmem:[%s1600_s1 + $0x58] sm:$0xff] (!%p229_p10)  ;;  %v553_v39 = vld [vmem:[%s1601_s2 + $0x70] sm:$0xff] (!%p229_p10)  ;;  %v307_v40 = vld [vmem:[%s1600_s1 + $0x20] sm:$0xff] (!%p229_p10) }
  0x16   : > { %s275_s7 = scalar_select %p274_p11, %s1153_s18, 1  ;;  %v554_v38 = vld [vmem:[%s1601_s2 + $0x78] sm:$0xff]  ;;  %v315_v41 = vld [vmem:[%s1600_s1 + $0x60] sm:$0xff]  ;;  %v668_v42 = vld [vmem:[%s1602_s3 + $0x8] sm:$0xff] }
  0x17   : > { %v667_v43 = vld [vmem:[%s1602_s3] sm:$0xff]  ;;  %v308_v44 = vld [vmem:[%s1600_s1 + $0x28] sm:$0xff]  ;;  %v670_v46 = vld [vmem:[%s1602_s3 + $0x18] sm:$0xff] }
  0x18   : > { %s1021_s12 = smul.u32 80, %s275_s7  ;;  %582 = vperm.xlu1 %1082, %v544_v17   ;;  %577 = vperm.xlu0 %1081, %v543_v18   ;;  %v316_v45 = vld [vmem:[%s1600_s1 + $0x68] sm:$0xff]  ;;  %v669_v47 = vld [vmem:[%s1602_s3 + $0x10] sm:$0xff]  ;;  %v671_v51 = vld [vmem:[%s1602_s3 + $0x20] sm:$0xff] }
  0x19   : > { %v309_v48 = vld [vmem:[%s1600_s1 + $0x30] sm:$0xff]  ;;  %v672_v50 = vld [vmem:[%s1602_s3 + $0x28] sm:$0xff]  ;;  %v310_v52 = vld [vmem:[%s1600_s1 + $0x38] sm:$0xff] }
  0x1a   : > { %s1267_s21 = scalar_lea.vmem %s1599_s0, %s1021_s12  ;;  %v317_v49 = vld [vmem:[%s1600_s1 + $0x70] sm:$0xff]  ;;  %v318_v53 = vld [vmem:[%s1600_s1 + $0x78] sm:$0xff]  ;;  %v676_v56 = vld [vmem:[%s1602_s3 + $0x48] sm:$0xff]  ;;  %s846_s12 = sshll.u32 %s1476_s10, 4  ;;  %s1544_s12 = int_to_ptr.vmem [resolvable:$true] %s846_s12 }
  0x1b   : > { %v320_v6 = vld [vmem:[%s1267_s21 + $0x8] sm:$0xff]  ;;  %v322_v7 = vld [vmem:[%s1267_s21 + $0x18] sm:$0xff]  ;;  %v319_v8 = vld [vmem:[%s1267_s21] sm:$0xff]  ;;  %p1090_p1 = scmp.lt.s32.totalorder %s1544_s12, %s1088_s26 }
  0x1c   : > { %v1007_v9 = vpack.c.bf16 %v322_v7, %v320_v6  ;;  %v321_v10 = vld [vmem:[%s1267_s21 + $0x10] sm:$0xff]  ;;  %v324_v11 = vld [vmem:[%s1267_s21 + $0x28] sm:$0xff]  ;;  %v326_v12 = vld [vmem:[%s1267_s21 + $0x38] sm:$0xff]  ;;  %592 = vperm.xlu1 %1082, %v546_v21   ;;  %587 = vperm.xlu0 %1081, %v545_v22  }
  0x1d   : > { %v1009_v13 = vpack.c.bf16 %v321_v10, %v319_v8  ;;  %v1011_v14 = vpack.c.bf16 %v326_v12, %v324_v11  ;;  %v323_v15 = vld [vmem:[%s1267_s21 + $0x20] sm:$0xff]  ;;  %v325_v16 = vld [vmem:[%s1267_s21 + $0x30] sm:$0xff]  ;;  %v328_v20 = vld [vmem:[%s1267_s21 + $0x48] sm:$0xff] }
  0x1e   : > { %1008 = vmatprep.subr.bf16.mxu0 %v1007_v9  ;;  %1015 = vmatprep.subr.bf16.mxu1 %v1007_v9  ;;  %v1013_v19 = vpack.c.bf16 %v325_v16, %v323_v15  ;;  %v327_v23 = vld [vmem:[%s1267_s21 + $0x40] sm:$0xff]  ;;  %v674_v54 = vld [vmem:[%s1602_s3 + $0x38] sm:$0xff]  ;;  %v673_v55 = vld [vmem:[%s1602_s3 + $0x30] sm:$0xff]  ;;  %s1083_s21 = scalar_lea.vmem %s1544_s12, 4096 }
  0x1f   : > { %1010 = vmatpush1.bf16.msra.mxu0 %v1009_v13  ;;  %1018 = vmatpush1.bf16.msra.mxu1 %v1009_v13  ;;  %v675_v57 = vld [vmem:[%s1602_s3 + $0x40] sm:$0xff]  ;;  %v678_v58 = vld [vmem:[%s1602_s3 + $0x58] sm:$0xff]  ;;  %v677_v59 = vld [vmem:[%s1602_s3 + $0x50] sm:$0xff]  ;;  %p1084_p12 = scmp.ne.s32.totalorder %s1544_s12, %s1083_s21  ;;  %p1091_p2 = scmp.lt.s32.totalorder %s1089_s29, %s1083_s21 }
  0x20   : > { %1012 = vmatprep.subr.bf16.mxu0 %v1011_v14  ;;  %1016 = vmatprep.subr.bf16.mxu1 %v1011_v14  ;;  %v680_v60 = vld [vmem:[%s1602_s3 + $0x68] sm:$0xff]  ;;  %v679_v61 = vld [vmem:[%s1602_s3 + $0x60] sm:$0xff]  ;;  %v682_v62 = vld [vmem:[%s1602_s3 + $0x78] sm:$0xff] }
  0x21   : > { %602 = vperm.xlu1 %1082, %v548_v26   ;;  %597 = vperm.xlu0 %1081, %v547_v27   ;;  %v681_v63 = vld [vmem:[%s1602_s3 + $0x70] sm:$0xff]  ;;  %p1085_p13 = pnand %p1084_p12, %p1233_p4  ;;  %p1092_p3 = por %p1091_p2, %p1090_p1 }
  0x23   : > { %1014 = vmatpush1.bf16.msra.mxu0 %v1013_v19  ;;  %1019 = vmatpush1.bf16.msra.mxu1 %v1013_v19  ;;  %p1086_p0 = pneg %p1085_p13 }
  0x24   : > { %386 = vmatprep.subr.mxu0 %v328_v20  ;;  %1017 = vmatprep.subr.mxu1 %v328_v20 }
  0x25   : > { %612 = vperm.xlu1 %1082, %v550_v30   ;;  %607 = vperm.xlu0 %1081, %v549_v31   ;;  %p1093_p5 = pnand %p1092_p3, %p1086_p0 }
  0x27   : > { %387 = vmatpush1.msra.mxu0 %v327_v23  ;;  %1020 = vmatpush1.msra.mxu1 %v327_v23 }
  0x28   : > { %985 = vmatmul.mubr.msk.f32.vlgmr.msra.gmra.mrb[0].mxu0 %vm329_vm0, %v303_v24  ;;  %993 = vmatmul.mubr.msk.f32.vlgmr.msra.gmra.mrb[0].mxu1 %vm329_vm0, %v311_v25 }
  0x29   : > { %448 = vmatprep.mubr.f32.mxu0 %v1164_v5  ;;  %496 = vmatprep.mubr.f32.mxu1 %v1164_v5 }
  0x2a   : > { %622 = vperm.xlu1 %1082, %v552_v34   ;;  %617 = vperm.xlu0 %1081, %v551_v35  }
  0x2c   : > { %986 = vmatmul.mubr.msk.f32.gmra.mrb[2].mxu0 %vm329_vm0, %v304_v28  ;;  %994 = vmatmul.mubr.msk.f32.gmra.mrb[2].mxu1 %vm329_vm0, %v312_v29 }
  0x2d   : > { %454 = vmatprep.mubr.f32.mxu0 %v1164_v5  ;;  %502 = vmatprep.mubr.f32.mxu1 %v1164_v5 }
  0x2e   : > { %632 = vperm.xlu1 %1082, %v554_v38   ;;  %627 = vperm.xlu0 %1081, %v553_v39  }
  0x30   : > { %987 = vmatmul.mubr.msk.f32.gmra.mrb[4].mxu0 %vm329_vm0, %v305_v32  ;;  %995 = vmatmul.mubr.msk.f32.gmra.mrb[4].mxu1 %vm329_vm0, %v313_v33 }
  0x31   : > { %460 = vmatprep.mubr.f32.mxu0 %v1164_v5  ;;  %508 = vmatprep.mubr.f32.mxu1 %v1164_v5 }
  0x32   : > { %690 = vperm.xlu1 %1082, %v668_v42   ;;  %685 = vperm.xlu0 %1081, %v667_v43  }
  0x34   : > { %988 = vmatmul.mubr.msk.f32.gmra.mrb[6].mxu0 %vm329_vm0, %v306_v36  ;;  %996 = vmatmul.mubr.msk.f32.gmra.mrb[6].mxu1 %vm329_vm0, %v314_v37 }
  0x35   : > { %466 = vmatprep.mubr.f32.mxu0 %v1164_v5  ;;  %514 = vmatprep.mubr.f32.mxu1 %v1164_v5 }
  0x36   : > { %700 = vperm.xlu1 %1082, %v670_v46   ;;  %695 = vperm.xlu0 %1081, %v669_v47  }
  0x38   : > { %989 = vmatmul.mubr.msk.f32.gmra.mrb[8].mxu0 %vm329_vm0, %v307_v40  ;;  %997 = vmatmul.mubr.msk.f32.gmra.mrb[8].mxu1 %vm329_vm0, %v315_v41 }
  0x39   : > { %472 = vmatprep.mubr.f32.mxu0 %v1164_v5  ;;  %520 = vmatprep.mubr.f32.mxu1 %v1164_v5 }
  0x3a   : > { %710 = vperm.xlu1 %1082, %v672_v50   ;;  %705 = vperm.xlu0 %1081, %v671_v51  }
  0x3c   : > { %990 = vmatmul.mubr.msk.f32.gmra.mrb[10].mxu0 %vm329_vm0, %v308_v44  ;;  %998 = vmatmul.mubr.msk.f32.gmra.mrb[10].mxu1 %vm329_vm0, %v316_v45 }
  0x3d   : > { %478 = vmatprep.mubr.f32.mxu0 %v1164_v5  ;;  %526 = vmatprep.mubr.f32.mxu1 %v1164_v5 }
  0x3e   : > { %720 = vperm.xlu1 %1082, %v674_v54   ;;  %715 = vperm.xlu0 %1081, %v673_v55  }
  0x40   : > { %991 = vmatmul.mubr.msk.f32.gmra.mrb[12].mxu0 %vm329_vm0, %v309_v48  ;;  %999 = vmatmul.mubr.msk.f32.gmra.mrb[12].mxu1 %vm329_vm0, %v317_v49 }
  0x41   : > { %484 = vmatprep.mubr.f32.mxu0 %v1164_v5  ;;  %532 = vmatprep.mubr.f32.mxu1 %v1164_v5 }
  0x42   : > { %730 = vperm.xlu1 %1082, %v676_v56   ;;  %725 = vperm.xlu0 %1081, %v675_v57  }
  0x44   : > { %992 = vmatmul.mubr.msk.f32.gmra.mrb[14].mxu0 %vm329_vm0, %v310_v52  ;;  %1000 = vmatmul.mubr.msk.f32.gmra.mrb[14].mxu1 %vm329_vm0, %v318_v53 }
  0x46   : > { %740 = vperm.xlu1 %1082, %v678_v58   ;;  %735 = vperm.xlu0 %1081, %v677_v59  }
  0x4a   : > { %750 = vperm.xlu1 %1082, %v680_v60   ;;  %745 = vperm.xlu0 %1081, %v679_v61  }
  0x4e   : > { %760 = vperm.xlu1 %1082, %v682_v62   ;;  %755 = vperm.xlu0 %1081, %v681_v63  }
  0x8f   : > { %v558_v0 = vpop.permute.xlu0 %557  ;;  %v1441_v1 = vpop.permute.xlu1 %567 }
  0x93   : > { %v563_v2 = vpop.permute.xlu0 %562  ;;  %v1443_v3 = vpop.permute.xlu1 %572 }
  0x97   : > { %v1445_v4 = vpop.permute.xlu0 %577  ;;  %v1447_v5 = vpop.permute.xlu1 %582 }
  0x9b   : > { %v1449_v6 = vpop.permute.xlu0 %587  ;;  %v1451_v7 = vpop.permute.xlu1 %592 }
  0xa0   : > { %v598_v8 = vpop.permute.xlu0 %597  ;;  %v603_v9 = vpop.permute.xlu1 %602 }
  0xa4   : > { %v608_v10 = vpop.permute.xlu0 %607  ;;  %v1453_v11 = vpop.permute.xlu1 %612 }
  0xa9   : > { %v1455_v12 = vpop.permute.xlu0 %617  ;;  %v1457_v13 = vpop.permute.xlu1 %622 }
  0xad   : > { %v1459_v14 = vpop.permute.xlu0 %627  ;;  %v1461_v15 = vpop.permute.xlu1 %632 }
  0xb1   : > { %v686_v16 = vpop.permute.xlu0 %685  ;;  %v691_v17 = vpop.permute.xlu1 %690 }
  0xb5   : > { %v696_v18 = vpop.permute.xlu0 %695  ;;  %v1463_v19 = vpop.permute.xlu1 %700 }
  0xb9   : > { %v1465_v20 = vpop.permute.xlu0 %705  ;;  %v1467_v21 = vpop.permute.xlu1 %710 }
  0xbd   : > { %v1469_v22 = vpop.permute.xlu0 %715  ;;  %v1472_v23 = vpop.permute.xlu1 %720 }
  0xc1   : > { %v726_v30 = vpop.permute.xlu0 %725  ;;  %v731_v43 = vpop.permute.xlu1 %730 }
  0xc5   : > { %v736_v56 = vpop.permute.xlu0 %735 }
  0xfb   : > { %v444_v24 = vpop.f32.mrb[0].mxu0  ;;  %v492_v25 = vpop.f32.mrb[0].mxu1 }
  0xfc   : > { %v635_v26 = vmul.f32 %v558_v0, %v444_v24  ;;  %v651_v27 = vmul.f32 %v598_v8, %v492_v25  ;;  %v446_v28 = vpop.f32.mrb[1].mxu0  ;;  %v494_v29 = vpop.f32.mrb[1].mxu1 }
  0xfd   : > { %v636_v31 = vmul.f32 %v558_v0, %v446_v28  ;;  %v652_v32 = vmul.f32 %v598_v8, %v494_v29 }
  0xfe   : > { %v763_v33 = vadd.f32 %v686_v16, %v635_v26  ;;  %v779_v34 = vadd.f32 %v726_v30, %v651_v27 }
  0xff   : > { %v764_v35 = vadd.f32 %v686_v16, %v636_v31  ;;  %v780_v36 = vadd.f32 %v726_v30, %v652_v32  ;;  %v450_v37 = vpop.f32.mrb[2].mxu0  ;;  %v498_v38 = vpop.f32.mrb[2].mxu1 }
 0x100   : > { %795 = vst [vmem:[%s1476_s10] sm:$0xff] %v763_v33  ;;  %811 = vst [vmem:[%s1476_s10 + $0x80] sm:$0xff] %v779_v34  ;;  %v637_v39 = vmul.f32 %v563_v2, %v450_v37  ;;  %v653_v40 = vmul.f32 %v603_v9, %v498_v38  ;;  %v452_v41 = vpop.f32.mrb[3].mxu0  ;;  %v500_v42 = vpop.f32.mrb[3].mxu1 }
 0x101   : > { %796 = vst [vmem:[%s1476_s10 + $0x8] sm:$0xff] %v764_v35  ;;  %812 = vst [vmem:[%s1476_s10 + $0x88] sm:$0xff] %v780_v36  ;;  %v638_v44 = vmul.f32 %v563_v2, %v452_v41  ;;  %v654_v45 = vmul.f32 %v603_v9, %v500_v42  ;;  %v746_v32 = vpop.permute.xlu0 %745 }
 0x102   : > { %v765_v46 = vadd.f32 %v691_v17, %v637_v39  ;;  %v781_v47 = vadd.f32 %v731_v43, %v653_v40 }
 0x103   : > { %v766_v48 = vadd.f32 %v691_v17, %v638_v44  ;;  %v782_v49 = vadd.f32 %v731_v43, %v654_v45  ;;  %v456_v50 = vpop.f32.mrb[4].mxu0  ;;  %v504_v51 = vpop.f32.mrb[4].mxu1 }
 0x104   : > { %797 = vst [vmem:[%s1476_s10 + $0x10] sm:$0xff] %v765_v46  ;;  %813 = vst [vmem:[%s1476_s10 + $0x90] sm:$0xff] %v781_v47  ;;  %v639_v52 = vmul.f32 %v1441_v1, %v456_v50  ;;  %v655_v53 = vmul.f32 %v608_v10, %v504_v51  ;;  %v458_v54 = vpop.f32.mrb[5].mxu0  ;;  %v506_v55 = vpop.f32.mrb[5].mxu1 }
 0x105   : > { %798 = vst [vmem:[%s1476_s10 + $0x18] sm:$0xff] %v766_v48  ;;  %814 = vst [vmem:[%s1476_s10 + $0x98] sm:$0xff] %v782_v49  ;;  %v640_v57 = vmul.f32 %v1441_v1, %v458_v54  ;;  %v656_v58 = vmul.f32 %v608_v10, %v506_v55  ;;  %v741_v17 = vpop.permute.xlu1 %740  ;;  %v756_v51 = vpop.permute.xlu0 %755 }
 0x106   : > { %v767_v59 = vadd.f32 %v696_v18, %v639_v52  ;;  %v783_v60 = vadd.f32 %v736_v56, %v655_v53 }
 0x107   : > { %v768_v61 = vadd.f32 %v696_v18, %v640_v57  ;;  %v784_v62 = vadd.f32 %v736_v56, %v656_v58  ;;  %v462_v63 = vpop.f32.mrb[6].mxu0  ;;  %v510_v0 = vpop.f32.mrb[6].mxu1 }
 0x108   : > { %799 = vst [vmem:[%s1476_s10 + $0x20] sm:$0xff] %v767_v59  ;;  %815 = vst [vmem:[%s1476_s10 + $0xa0] sm:$0xff] %v783_v60  ;;  %v641_v2 = vmul.f32 %v1443_v3, %v462_v63  ;;  %v657_v8 = vmul.f32 %v1453_v11, %v510_v0  ;;  %v464_v9 = vpop.f32.mrb[7].mxu0  ;;  %v512_v16 = vpop.f32.mrb[7].mxu1 }
 0x109   : > { %800 = vst [vmem:[%s1476_s10 + $0x28] sm:$0xff] %v768_v61  ;;  %816 = vst [vmem:[%s1476_s10 + $0xa8] sm:$0xff] %v784_v62  ;;  %v642_v1 = vmul.f32 %v1443_v3, %v464_v9  ;;  %v658_v10 = vmul.f32 %v1453_v11, %v512_v16  ;;  %v751_v42 = vpop.permute.xlu1 %750 }
 0x10a   : > { %v769_v18 = vadd.f32 %v1463_v19, %v641_v2  ;;  %v785_v24 = vadd.f32 %v741_v17, %v657_v8 }
 0x10b   : > { %v770_v25 = vadd.f32 %v1463_v19, %v642_v1  ;;  %v786_v26 = vadd.f32 %v741_v17, %v658_v10  ;;  %v468_v27 = vpop.f32.mrb[8].mxu0  ;;  %v516_v28 = vpop.f32.mrb[8].mxu1 }
 0x10c   : > { %801 = vst [vmem:[%s1476_s10 + $0x30] sm:$0xff] %v769_v18  ;;  %817 = vst [vmem:[%s1476_s10 + $0xb0] sm:$0xff] %v785_v24  ;;  %v643_v29 = vmul.f32 %v1445_v4, %v468_v27  ;;  %v659_v30 = vmul.f32 %v1455_v12, %v516_v28  ;;  %v470_v3 = vpop.f32.mrb[9].mxu0  ;;  %v518_v31 = vpop.f32.mrb[9].mxu1 }
 0x10d   : > { %802 = vst [vmem:[%s1476_s10 + $0x38] sm:$0xff] %v770_v25  ;;  %818 = vst [vmem:[%s1476_s10 + $0xb8] sm:$0xff] %v786_v26  ;;  %v644_v11 = vmul.f32 %v1445_v4, %v470_v3  ;;  %v660_v19 = vmul.f32 %v1455_v12, %v518_v31  ;;  %v761_v61 = vpop.permute.xlu1 %760 }
 0x10e   : > { %v771_v33 = vadd.f32 %v1465_v20, %v643_v29  ;;  %v787_v34 = vadd.f32 %v746_v32, %v659_v30 }
 0x10f   : > { %v772_v35 = vadd.f32 %v1465_v20, %v644_v11  ;;  %v788_v36 = vadd.f32 %v746_v32, %v660_v19  ;;  %v474_v37 = vpop.f32.mrb[10].mxu0  ;;  %v522_v38 = vpop.f32.mrb[10].mxu1 }
 0x110   : > { %803 = vst [vmem:[%s1476_s10 + $0x40] sm:$0xff] %v771_v33  ;;  %819 = vst [vmem:[%s1476_s10 + $0xc0] sm:$0xff] %v787_v34  ;;  %v645_v39 = vmul.f32 %v1447_v5, %v474_v37  ;;  %v661_v40 = vmul.f32 %v1457_v13, %v522_v38  ;;  %v476_v4 = vpop.f32.mrb[11].mxu0  ;;  %v524_v41 = vpop.f32.mrb[11].mxu1 }
 0x111   : > { %804 = vst [vmem:[%s1476_s10 + $0x48] sm:$0xff] %v772_v35  ;;  %820 = vst [vmem:[%s1476_s10 + $0xc8] sm:$0xff] %v788_v36  ;;  %v646_v12 = vmul.f32 %v1447_v5, %v476_v4  ;;  %v662_v20 = vmul.f32 %v1457_v13, %v524_v41 }
 0x112   : > { %v773_v43 = vadd.f32 %v1467_v21, %v645_v39  ;;  %v789_v44 = vadd.f32 %v751_v42, %v661_v40 }
 0x113   : > { %v774_v45 = vadd.f32 %v1467_v21, %v646_v12  ;;  %v790_v46 = vadd.f32 %v751_v42, %v662_v20  ;;  %v480_v47 = vpop.f32.mrb[12].mxu0  ;;  %v528_v48 = vpop.f32.mrb[12].mxu1 }
 0x114   : > { %805 = vst [vmem:[%s1476_s10 + $0x50] sm:$0xff] %v773_v43  ;;  %821 = vst [vmem:[%s1476_s10 + $0xd0] sm:$0xff] %v789_v44  ;;  %v647_v49 = vmul.f32 %v1449_v6, %v480_v47  ;;  %v663_v50 = vmul.f32 %v1459_v14, %v528_v48  ;;  %v482_v5 = vpop.f32.mrb[13].mxu0  ;;  %v530_v13 = vpop.f32.mrb[13].mxu1 }
 0x115   : > { %806 = vst [vmem:[%s1476_s10 + $0x58] sm:$0xff] %v774_v45  ;;  %822 = vst [vmem:[%s1476_s10 + $0xd8] sm:$0xff] %v790_v46  ;;  %v648_v21 = vmul.f32 %v1449_v6, %v482_v5  ;;  %v664_v52 = vmul.f32 %v1459_v14, %v530_v13 }
 0x116   : > { %v775_v53 = vadd.f32 %v1469_v22, %v647_v49  ;;  %v791_v54 = vadd.f32 %v756_v51, %v663_v50 }
 0x117   : > { %v776_v55 = vadd.f32 %v1469_v22, %v648_v21  ;;  %v792_v56 = vadd.f32 %v756_v51, %v664_v52  ;;  %v486_v57 = vpop.f32.mrb[14].mxu0  ;;  %v534_v58 = vpop.f32.mrb[14].mxu1 }
 0x118   : > { %807 = vst [vmem:[%s1476_s10 + $0x60] sm:$0xff] %v775_v53  ;;  %823 = vst [vmem:[%s1476_s10 + $0xe0] sm:$0xff] %v791_v54  ;;  %v649_v59 = vmul.f32 %v1451_v7, %v486_v57  ;;  %v665_v6 = vmul.f32 %v1461_v15, %v534_v58  ;;  %v488_v14 = vpop.f32.mrb[15].mxu0  ;;  %v536_v60 = vpop.f32.mrb[15].mxu1 }
 0x119   : > { %808 = vst [vmem:[%s1476_s10 + $0x68] sm:$0xff] %v776_v55  ;;  %824 = vst [vmem:[%s1476_s10 + $0xe8] sm:$0xff] %v792_v56  ;;  %v650_v22 = vmul.f32 %v1451_v7, %v488_v14  ;;  %v666_v62 = vmul.f32 %v1461_v15, %v536_v60 }
 0x11a   : > { %v777_v63 = vadd.f32 %v1472_v23, %v649_v59  ;;  %v793_v0 = vadd.f32 %v761_v61, %v665_v6 }
 0x11b   : > { %v778_v2 = vadd.f32 %v1472_v23, %v650_v22  ;;  %v794_v8 = vadd.f32 %v761_v61, %v666_v62 }
 0x11c   : > { %809 = vst [vmem:[%s1476_s10 + $0x70] sm:$0xff] %v777_v63  ;;  %825 = vst [vmem:[%s1476_s10 + $0xf0] sm:$0xff] %v793_v0 }
 0x11d   : > { %810 = vst [vmem:[%s1476_s10 + $0x78] sm:$0xff] %v778_v2  ;;  %826 = vst [vmem:[%s1476_s10 + $0xf8] sm:$0xff] %v794_v8 }
 0x11e   : > { %1096 = shalt.err (!%p1093_p5)
}
 0x11f   : > { %s1097_s30 = scalar_lea.hbm %s1542_s14, 4096  ;;  %s1101_s7 = scalar_lea.hbm %s1603_s4, 8192 }
 0x120   : > { %p1098_p6 = scmp.ne.s32.totalorder %s1542_s14, %s1097_s30  ;;  %p1102_p10 = scmp.lt.u32.totalorder %s1542_s14, %s1603_s4 }
 0x121   : > { %p1103_p11 = scmp.lt.u32.totalorder %s1101_s7, %s1097_s30  ;;  %p1105_p13 = scmp.lt.u32.totalorder %s1097_s30, %s1542_s14 }
 0x122   : > { %p1099_p7 = pnand %p1098_p6, %p1233_p4 }
 0x123   : > { %p1104_p12 = por %p1103_p11, %p1102_p10 }
 0x124   : > { %p1100_p9 = pneg %p1099_p7 }
 0x125   : > { %p1106_p0 = por %p1105_p13, %p1104_p12 }
 0x127   : > { %p1107_p1 = pnand %p1106_p0, %p1100_p9 }
 0x129   : > { %1110 = shalt.err (!%p1107_p1)
}
 0x12a   : > { %s1166_s10 = smov 256   ;;  %s1167_s11 = smov 16  }
 0x12b   : > { %1022 = dma.vmem_to_hbm [thread:$0]  (%p1233_p4), %s1544_s12, 4096, %s1542_s14, %s1553_s22, %s1166_s10, %s1166_s10, %s1167_s11  }
 0x12c PF: > { %p1028_p2 = scmp.ge.s32.totalorder %s1161_s20, 2  ;;  %s861_s18 = sand.u32 1, %s1141_s15  }
 0x12d   : > { %s862_s13 = scalar_lea.sflag [#allocation3], %s861_s18 }
 0x12e   : > { %p1025_p3 = pnand %p1028_p2, %p1240_p8 }
 0x130   : > { %1136 = dma.done.wait (!%p1025_p3), %s862_s13, 4096  }
 0x131   : > { %1138 = vsyncadd (!%p1025_p3), %s862_s13, 4294963200  ;;  %s17_s20 = sadd.s32 1, %s1161_s20   ;;  %s1606_s15 = smov %s1145_s16 }
 0x132   : > { %p14_p5 = scmp.ge.s32.totalorder %s17_s20, 4   ;;  %s1607_s16 = smov %s1149_s17 }
 0x133   : > { %s1608_s17 = smov %s1246_s28  ;;  %s1609_s18 = smov %s1157_s19 }
 0x134   : > { %s1610_s19 = smov %s1612_s23  ;;  %16 = sbr.rel (!%p14_p5) target bundleno = 4 (0x4), region = 80 }
 0x13b   :  { %867 = vsyncpa [#allocation3], 1 }
 0x13c   :  { %869 = vsyncpa [#allocation3 + $0x1], 1 }

</bundles_post_ra>
